<compile_context>
chip_gen: v7x
topology: tpu7x:2x2x1
jax: 0.10.0
libtpu: 0.0.40
codegen_flags: <defaults>
</compile_context>

<pallas_src>
import jax
import jax.numpy as jnp
from jax.experimental import pallas as pl
from jax.experimental.pallas import tpu as pltpu

_ROW_ALIGN = 128                                # lane width; multiple of all sublane packings
_STEP_INPUT_BYTES_TARGET = 8 * 1024 * 1024      # ~8 MiB of input per grid step


def _round_up(x, m):
    return ((x + m - 1) // m) * m


def _tpu_hw_info():
    """Return (vmem_capacity_bytes, num_tensorcores) with conservative fallbacks."""
    vmem_cap = 64 * 1024 * 1024        # conservative default: v7x physical VMEM
    num_cores = 1
    try:
        info = pltpu.get_tpu_info()
        cap = getattr(info, "vmem_capacity_bytes", None)
        if cap:
            vmem_cap = int(cap)
        nc = getattr(info, "num_cores", None)
        if nc:
            num_cores = int(nc)
    except Exception:
        pass
    try:
        kind = jax.devices()[0].device_kind.lower()
        if ("v7" in kind or "7x" in kind) and num_cores < 2:
            num_cores = 2
    except Exception:
        pass
    return vmem_cap, num_cores


def _distmult_kernel(sub_ref, obj_ref, rel_ref, out_ref, acc_ref):
    kd = pl.program_id(1)

    @pl.when(kd == 0)
    def _init():
        acc_ref[...] = jnp.zeros_like(acc_ref)

    prod = (sub_ref[...].astype(jnp.float32)
            * obj_ref[...].astype(jnp.float32)
            * rel_ref[...].astype(jnp.float32))
    # Per-row partial sums for this D tile, relayouted onto the lane axis
    # (small XLU transpose) so the output store is lane-dense and unmasked.
    acc_ref[...] += jnp.transpose(jnp.sum(prod, axis=-1, keepdims=True), (1, 0))

    @pl.when(kd == pl.num_programs(1) - 1)
    def _finalize():
        out_ref[...] = acc_ref[...].astype(out_ref.dtype)


def distmult_forward(sub_emb, obj_emb, rel_emb, *, block_rows=None):
    assert sub_emb.shape == obj_emb.shape == rel_emb.shape
    assert sub_emb.ndim == 2
    N, D = sub_emb.shape
    dtype = sub_emb.dtype
    itemsize = jnp.dtype(dtype).itemsize

    vmem_cap, num_cores = _tpu_hw_info()
    # Double-buffered input working-set budget: ~3/4 of physical VMEM, capped
    # at 96 MiB (=> ~48 MiB on v7x, up to 96 MiB on v5e/v6e).
    wset_budget = min((vmem_cap * 3) // 4, 96 * 1024 * 1024)
    per_rowcol_bytes = 3 * 2 * itemsize          # 3 inputs x 2 pipeline buffers

    # --- D tiling (fallback for very large embedding dims) -------------------
    if per_rowcol_bytes * _ROW_ALIGN * D <= wset_budget:
        dblk, d_steps = D, 1
    else:
        dblk = (wset_budget // (per_rowcol_bytes * _ROW_ALIGN)) // 128 * 128
        dblk = max(128, dblk)
        d_steps = pl.cdiv(D, dblk)

    sub_p, obj_p, rel_p = sub_emb, obj_emb, rel_emb
    if d_steps * dblk != D:
        # Zero-pad D so every D tile is full (zeros contribute 0 to the sum).
        pad_cfg = ((0, 0), (0, d_steps * dblk - D))
        sub_p = jnp.pad(sub_p, pad_cfg)
        obj_p = jnp.pad(obj_p, pad_cfg)
        rel_p = jnp.pad(rel_p, pad_cfg)

    # --- Row tiling -----------------------------------------------------------
    max_rows = wset_budget // (per_rowcol_bytes * dblk)       # VMEM-budget cap
    if block_rows is None:
        # Target ~8 MiB of input per grid step to amortize per-step overhead.
        block_rows = max(1, _STEP_INPUT_BYTES_TARGET // (3 * dblk * itemsize))
    rows = min(block_rows, max_rows)
    rows = min(rows, _round_up(N, _ROW_ALIGN))                # don't exceed (padded) N
    if num_cores >= 2:
        # >= 2 TensorCores (v7x): target >= 2 grid steps per core so each
        # core's DMA pipeline still overlaps prefetch with compute.
        rows = min(rows, max(_ROW_ALIGN,
                             _round_up(pl.cdiv(N, 2 * num_cores), _ROW_ALIGN)))
    rows = max(_ROW_ALIGN, (rows // _ROW_ALIGN) * _ROW_ALIGN)

    # Pad tiny batches up to one full row tile (cheap: N < rows elements) so a
    # block is never larger than the array along the batch axis.
    if N < rows:
        row_pad = ((0, rows - N), (0, 0))
        sub_p = jnp.pad(sub_p, row_pad)
        obj_p = jnp.pad(obj_p, row_pad)
        rel_p = jnp.pad(rel_p, row_pad)

    nb = pl.cdiv(N, rows)
    grid = (nb, d_steps)

    in_spec = pl.BlockSpec((rows, dblk), lambda i, k: (i, k))
    out_spec = pl.BlockSpec((1, rows), lambda i, k: (0, i))   # lane-dense output block

    working_set = (per_rowcol_bytes * rows * dblk             # pipelined input buffers
                   + 32 * rows * max(itemsize, 4))            # output buffers + f32 scratch
    vmem_limit = int(min(vmem_cap,
                         max(32 * 1024 * 1024, working_set + 8 * 1024 * 1024)))

    out = pl.pallas_call(
        _distmult_kernel,
        out_shape=jax.ShapeDtypeStruct((1, nb * rows), dtype),
        grid_spec=pltpu.PrefetchScalarGridSpec(
            num_scalar_prefetch=0,
            grid=grid,
            in_specs=[in_spec, in_spec, in_spec],
            out_specs=out_spec,
            scratch_shapes=[pltpu.VMEM((1, rows), jnp.float32)],
        ),
        compiler_params=pltpu.CompilerParams(
            dimension_semantics=("parallel", "arbitrary"),
            vmem_limit_bytes=vmem_limit,
        ),
    )(sub_p, obj_p, rel_p)

    # (1, nb*rows) -> (nb*rows,) is metadata-only; [:N] drops the padded rows
    # of the final partial block (tiny N-element copy).
    return jnp.reshape(out, (nb * rows,))[:N]


def distmult_forward_ref(sub_emb, obj_emb, rel_emb):
    # Pure-JAX reference (f32 accumulation) for correctness checking.
    prod = (sub_emb.astype(jnp.float32)
            * obj_emb.astype(jnp.float32)
            * rel_emb.astype(jnp.float32))
    return jnp.sum(prod, axis=-1)


if __name__ == "__main__":
    # DistMultLayer has no parameters; only the three embedding inputs.
    key = jax.random.PRNGKey(0)
    k_sub, k_obj, k_rel = jax.random.split(key, 3)

    # 1) Small, module-consistent shapes: batch=16, hidden=128, float32.
    N, D = 16, 128
    sub_emb = jax.random.normal(k_sub, (N, D), dtype=jnp.float32)
    obj_emb = jax.random.normal(k_obj, (N, D), dtype=jnp.float32)
    rel_emb = jax.random.normal(k_rel, (N, D), dtype=jnp.float32)

    out = jax.block_until_ready(distmult_forward(sub_emb, obj_emb, rel_emb))
    ref = distmult_forward_ref(sub_emb, obj_emb, rel_emb)
    assert out.shape == (N,)
    assert jnp.allclose(out, ref, atol=1e-4, rtol=1e-4), "f32 mismatch vs reference"

    # 2) Ragged batch + bf16 inputs: partial row block, f32 in-kernel accumulation.
    N2 = 20
    sub2 = jax.random.normal(k_sub, (N2, D), jnp.float32).astype(jnp.bfloat16)
    obj2 = jax.random.normal(k_obj, (N2, D), jnp.float32).astype(jnp.bfloat16)
    rel2 = jax.random.normal(k_rel, (N2, D), jnp.float32).astype(jnp.bfloat16)
    out2 = jax.block_until_ready(distmult_forward(sub2, obj2, rel2))
    ref2 = distmult_forward_ref(sub2, obj2, rel2)
    assert out2.shape == (N2,)
    assert out2.dtype == jnp.bfloat16
    assert jnp.allclose(out2.astype(jnp.float32), ref2, atol=1e-1, rtol=2e-2), \
        "bf16 mismatch vs reference"

    # 3) Multiple row blocks + non-multiple-of-128 embedding dim.
    N3, D3 = 300, 96
    k3 = jax.random.split(key, 3)
    sub3 = jax.random.normal(k3[0], (N3, D3), dtype=jnp.float32)
    obj3 = jax.random.normal(k3[1], (N3, D3), dtype=jnp.float32)
    rel3 = jax.random.normal(k3[2], (N3, D3), dtype=jnp.float32)
    out3 = jax.block_until_ready(distmult_forward(sub3, obj3, rel3))
    ref3 = distmult_forward_ref(sub3, obj3, rel3)
    assert out3.shape == (N3,)
    assert jnp.allclose(out3, ref3, atol=1e-4, rtol=1e-4), "f32 ragged mismatch vs reference"

    print("KERNEL_OK")
</pallas_src>

<mosaic_0001>
module attributes {stable_mosaic.version = 11 : i64} {
  func.func @_distmult_kernel(%arg0: i32, %arg1: i32, %arg2: memref<128x128xf32, #tpu.memory_space<vmem>>, %arg3: memref<128x128xf32, #tpu.memory_space<vmem>>, %arg4: memref<128x128xf32, #tpu.memory_space<vmem>>, %arg5: memref<1x128xf32, #tpu.memory_space<vmem>>, %arg6: memref<1x128xf32, #tpu.memory_space<vmem>>) attributes {dimension_semantics = [#tpu.dimension_semantics<parallel>, #tpu.dimension_semantics<arbitrary>], iteration_bounds = array<i64: 1, 1>, scalar_prefetch = 0 : i64, scratch_operands = 1 : i64, tpu.core_type = #tpu.core_type<tc>, window_params = [{transform_indices = @transform_0, window_bounds = array<i64: 128, 128>}, {transform_indices = @transform_1, window_bounds = array<i64: 128, 128>}, {transform_indices = @transform_2, window_bounds = array<i64: 128, 128>}, {transform_indices = @transform_3, window_bounds = array<i64: 1, 128>}]} {
    %c0_i32 = arith.constant 0 : i32
    %0 = arith.cmpi eq, %arg1, %c0_i32 : i32
    %1 = arith.extui %0 : i1 to i32
    %c0_i32_0 = arith.constant 0 : i32
    %2 = arith.cmpi ne, %1, %c0_i32_0 : i32
    scf.if %2 {
      %cst_12 = arith.constant 0.000000e+00 : f32
      %17 = vector.broadcast %cst_12 : f32 to vector<1x128xf32>
      %c0_13 = arith.constant 0 : index
      %c0_14 = arith.constant 0 : index
      %18 = vector.load %arg6[%c0_13, %c0_14] : memref<1x128xf32, #tpu.memory_space<vmem>>, vector<1x128xf32>
      tpu.vector_store %arg6[%c0_13, %c0_14], %17 {strides = array<i32>} : memref<1x128xf32, #tpu.memory_space<vmem>>, vector<1x128xf32>,
    } else {
    }
    %c0 = arith.constant 0 : index
    %c0_1 = arith.constant 0 : index
    %3 = vector.load %arg2[%c0, %c0_1] : memref<128x128xf32, #tpu.memory_space<vmem>>, vector<128x128xf32>
    %c0_2 = arith.constant 0 : index
    %c0_3 = arith.constant 0 : index
    %4 = vector.load %arg3[%c0_2, %c0_3] : memref<128x128xf32, #tpu.memory_space<vmem>>, vector<128x128xf32>
    %5 = arith.mulf %3, %4 : vector<128x128xf32>
    %c0_4 = arith.constant 0 : index
    %c0_5 = arith.constant 0 : index
    %6 = vector.load %arg4[%c0_4, %c0_5] : memref<128x128xf32, #tpu.memory_space<vmem>>, vector<128x128xf32>
    %7 = arith.mulf %5, %6 : vector<128x128xf32>
    %c0_6 = arith.constant 0 : index
    %c0_7 = arith.constant 0 : index
    %8 = vector.load %arg6[%c0_6, %c0_7] : memref<1x128xf32, #tpu.memory_space<vmem>>, vector<1x128xf32>
    %cst = arith.constant dense<0.000000e+00> : vector<128xf32>
    %9 = vector.multi_reduction <add>, %7, %cst [1] : vector<128x128xf32> to vector<128xf32>
    %10 = vector.shape_cast %9 : vector<128xf32> to vector<128x1xf32>
    %11 = tpu.transpose %10, [1, 0] : vector<128x1xf32> -> vector<1x128xf32>
    %12 = arith.addf %8, %11 : vector<1x128xf32>
    %c0_8 = arith.constant 0 : index
    %c0_9 = arith.constant 0 : index
    %13 = vector.load %arg6[%c0_8, %c0_9] : memref<1x128xf32, #tpu.memory_space<vmem>>, vector<1x128xf32>
    tpu.vector_store %arg6[%c0_8, %c0_9], %12 {strides = array<i32>} : memref<1x128xf32, #tpu.memory_space<vmem>>, vector<1x128xf32>,
    %c0_i32_10 = arith.constant 0 : i32
    %14 = arith.cmpi eq, %arg1, %c0_i32_10 : i32
    %15 = arith.extui %14 : i1 to i32
    %c0_i32_11 = arith.constant 0 : i32
    %16 = arith.cmpi ne, %15, %c0_i32_11 : i32
    scf.if %16 {
      %c0_12 = arith.constant 0 : index
      %c0_13 = arith.constant 0 : index
      %17 = vector.load %arg6[%c0_12, %c0_13] : memref<1x128xf32, #tpu.memory_space<vmem>>, vector<1x128xf32>
      %c0_14 = arith.constant 0 : index
      %c0_15 = arith.constant 0 : index
      %18 = vector.load %arg5[%c0_14, %c0_15] : memref<1x128xf32, #tpu.memory_space<vmem>>, vector<1x128xf32>
      tpu.vector_store %arg5[%c0_14, %c0_15], %17 {strides = array<i32>} : memref<1x128xf32, #tpu.memory_space<vmem>>, vector<1x128xf32>,
    } else {
    }
    return
  }
  func.func @transform_0(%arg0: i32, %arg1: i32) -> (i32, i32) {
    %c0_i32 = arith.constant 0 : i32
    return %arg0, %arg1 : i32, i32
  }
  func.func @transform_1(%arg0: i32, %arg1: i32) -> (i32, i32) {
    %c0_i32 = arith.constant 0 : i32
    return %arg0, %arg1 : i32, i32
  }
  func.func @transform_2(%arg0: i32, %arg1: i32) -> (i32, i32) {
    %c0_i32 = arith.constant 0 : i32
    return %arg0, %arg1 : i32, i32
  }
  func.func @transform_3(%arg0: i32, %arg1: i32) -> (i32, i32) {
    %c0_i32 = arith.constant 0 : i32
    %c0_i32_0 = arith.constant 0 : i32
    return %c0_i32, %arg0 : i32, i32
  }
}

</mosaic_0001>

<bundles_post_ra>
// kernel: tpu_custom_call.1
= control target key start
LH: loop header
LB: loop body
LE: loop exit
PB: predicated region body
PF: predicated region fallthrough
CT: control target
= control target key end

     0   :  { %8 = vsyncpa [#allocation4], 0  ;;  %s421_s0 = inlined_call_operand.hbm [shape: f32[128,128], index: 0, kind: input, shape index: {}]   ;;  %s422_s1 = inlined_call_operand.hbm [shape: f32[128,128], index: 1, kind: input, shape index: {}]   ;;  %s423_s2 = inlined_call_operand.hbm [shape: f32[128,128], index: 2, kind: input, shape index: {}]   ;;  %s424_s3 = inlined_call_operand.hbm [shape: f32[1,128], index: 3, kind: output, shape index: {}]  }
   0x1   :  { %9 = vsyncpa [#allocation7], 0 }
   0x2   :  { %10 = vsyncpa [#allocation5], 0  ;;  %s330_s12 = smov [#allocation6]   ;;  %s331_s14 = smov [#allocation3]  }
   0x3   :  { %s28_s13 = sshll.u32 %s330_s12, 4  ;;  %s16_s15 = sshll.u32 %s331_s14, 4  ;;  %s29_s13 = int_to_ptr.vmem [resolvable:$true] %s28_s13  ;;  %s357_s15 = int_to_ptr.vmem [resolvable:$true] %s16_s15 }
   0x4   :  { %s236_s18 = scalar_lea.hbm %s422_s1, 2048 }
   0x5   :  { %p237_p0 = scmp.ne.s32.totalorder %s422_s1, %s236_s18  ;;  %p240_p1 = scmp.lt.u32.totalorder %s236_s18, %s422_s1 }
   0x7   :  { %p242_p2 = pnand %p240_p1, %p237_p0 }
   0x9   :  { %245 = shalt.err (!%p242_p2)
}
   0xa   :  { %s246_s23 = scalar_lea.vmem %s29_s13, 2048  ;;  %p251_p4 = scmp.lt.s32.totalorder %s29_s13, %s29_s13 }
   0xb   :  { %p247_p3 = scmp.ne.s32.totalorder %s29_s13, %s246_s23  ;;  %p252_p5 = scmp.lt.s32.totalorder %s246_s23, %s246_s23 }
   0xd   :  { %p253_p6 = por %p252_p5, %p251_p4 }
   0xf   :  { %p254_p7 = pnand %p253_p6, %p247_p3 }
  0x11   :  { %257 = shalt.err (!%p254_p7)
}
  0x12   :  { %s332_s24 = smov 128   ;;  %s333_s25 = smov 8  }
  0x13   :  { %34 = dma.hbm_to_vmem [thread:$0]  %s422_s1, 2048, %s29_s13, [#allocation7], %s332_s24, %s332_s24, %s333_s25  }
  0x14   :  { %s258_s30 = scalar_lea.hbm %s421_s0, 2048 }
  0x15   :  { %p259_p8 = scmp.ne.s32.totalorder %s421_s0, %s258_s30  ;;  %p262_p9 = scmp.lt.u32.totalorder %s258_s30, %s421_s0 }
  0x17   :  { %p264_p10 = pnand %p262_p9, %p259_p8 }
  0x19   :  { %267 = shalt.err (!%p264_p10)
}
  0x1a   :  { %s268_s8 = scalar_lea.vmem %s357_s15, 2048  ;;  %p273_p12 = scmp.lt.s32.totalorder %s357_s15, %s357_s15 }
  0x1b   :  { %p269_p11 = scmp.ne.s32.totalorder %s357_s15, %s268_s8  ;;  %p274_p13 = scmp.lt.s32.totalorder %s268_s8, %s268_s8 }
  0x1d   :  { %p275_p0 = por %p274_p13, %p273_p12 }
  0x1f   :  { %p276_p1 = pnand %p275_p0, %p269_p11 }
  0x21   :  { %279 = shalt.err (!%p276_p1)
}
  0x22   :  { %22 = dma.hbm_to_vmem [thread:$0]  %s421_s0, 2048, %s357_s15, [#allocation4], %s332_s24, %s332_s24, %s333_s25  }
  0x23   :  { %s334_s10 = smov [#allocation8]   ;;  %s280_s14 = scalar_lea.hbm %s423_s2, 2048 }
  0x24   :  { %s40_s11 = sshll.u32 %s334_s10, 4  ;;  %p281_p2 = scmp.ne.s32.totalorder %s423_s2, %s280_s14  ;;  %s41_s11 = int_to_ptr.vmem [resolvable:$true] %s40_s11 }
  0x25   :  { %p284_p3 = scmp.lt.u32.totalorder %s280_s14, %s423_s2 }
  0x27   :  { %p286_p4 = pnand %p284_p3, %p281_p2 }
  0x29   :  { %289 = shalt.err (!%p286_p4)
}
  0x2a   :  { %s290_s20 = scalar_lea.vmem %s41_s11, 2048  ;;  %p295_p6 = scmp.lt.s32.totalorder %s41_s11, %s41_s11 }
  0x2b   :  { %p291_p5 = scmp.ne.s32.totalorder %s41_s11, %s290_s20  ;;  %p296_p7 = scmp.lt.s32.totalorder %s290_s20, %s290_s20 }
  0x2d   :  { %p297_p8 = por %p296_p7, %p295_p6 }
  0x2f   :  { %p298_p9 = pnand %p297_p8, %p291_p5 }
  0x31   :  { %301 = shalt.err (!%p298_p9)
}
  0x32   :  { %46 = dma.hbm_to_vmem [thread:$0]  %s423_s2, 2048, %s41_s11, [#allocation7], %s332_s24, %s332_s24, %s333_s25  }
  0x33   :  { %324 = dma.done.wait [#allocation4], 2048  }
  0x34   :  { %325 = vsyncadd [#allocation4], 4294965248 }
  0x35   :  { %326 = dma.done.wait [#allocation7], 4096  }
  0x36   :  { %327 = vsyncadd [#allocation7], 4294963200  ;;  %v61_v0 = vld [vmem:[#allocation3] sm:$0xff]  ;;  %v62_v4 = vld [vmem:[#allocation3 + $0x8] sm:$0xff]  ;;  %s336_s2 = smov [#allocation9]  }
  0x37   :  { %v77_v1 = vld [vmem:[#allocation6] sm:$0xff]  ;;  %v78_v5 = vld [vmem:[#allocation6 + $0x8] sm:$0xff]  ;;  %v63_v8 = vld [vmem:[#allocation3 + $0x10] sm:$0xff]  ;;  %s219_s21 = sshll.u32 %s336_s2, 4  ;;  %s220_s21 = int_to_ptr.vmem [resolvable:$true] %s219_s21 }
  0x38   :  { %v109_v2 = vld [vmem:[#allocation8] sm:$0xff]  ;;  %v93_v3 = vmul.f32 %v77_v1, %v61_v0  ;;  %v110_v6 = vld [vmem:[#allocation8 + $0x8] sm:$0xff]  ;;  %v94_v7 = vmul.f32 %v78_v5, %v62_v4  ;;  %v79_v9 = vld [vmem:[#allocation6 + $0x10] sm:$0xff]  ;;  %s302_s22 = scalar_lea.vmem %s220_s21, 16  ;;  %s306_s23 = scalar_lea.vmem %s220_s21, 32 }
  0x39   :  { %v111_v10 = vld [vmem:[#allocation8 + $0x10] sm:$0xff]  ;;  %v95_v12 = vmul.f32 %v79_v9, %v63_v8  ;;  %v64_v13 = vld [vmem:[#allocation3 + $0x18] sm:$0xff]  ;;  %v65_v17 = vld [vmem:[#allocation3 + $0x20] sm:$0xff]  ;;  %p303_p10 = scmp.ne.s32.totalorder %s220_s21, %s302_s22  ;;  %p307_p11 = scmp.lt.s32.totalorder %s220_s21, %s220_s21 }
  0x3a   :  { %v125_v11 = vmul.f32 %v109_v2, %v93_v3  ;;  %v80_v14 = vld [vmem:[#allocation6 + $0x18] sm:$0xff]  ;;  %v81_v18 = vld [vmem:[#allocation6 + $0x20] sm:$0xff]  ;;  %v126_v19 = vmul.f32 %v110_v6, %v94_v7  ;;  %v66_v22 = vld [vmem:[#allocation3 + $0x28] sm:$0xff]  ;;  %p308_p12 = scmp.lt.s32.totalorder %s306_s23, %s302_s22 }
  0x3b   :  { %v96_v15 = vmul.f32 %v80_v14, %v64_v13  ;;  %v112_v16 = vld [vmem:[#allocation8 + $0x18] sm:$0xff]  ;;  %v127_v20 = vmul.f32 %v111_v10, %v95_v12  ;;  %v97_v21 = vmul.f32 %v81_v18, %v65_v17  ;;  %v82_v23 = vld [vmem:[#allocation6 + $0x28] sm:$0xff]  ;;  %v113_v24 = vld [vmem:[#allocation8 + $0x20] sm:$0xff] }
  0x3c   :  { %142 = vadd.xlane.f32.xlu0 %v125_v11  ;;  %v67_v25 = vld [vmem:[#allocation3 + $0x30] sm:$0xff]  ;;  %v98_v28 = vmul.f32 %v82_v23, %v66_v22  ;;  %v114_v29 = vld [vmem:[#allocation8 + $0x28] sm:$0xff]  ;;  %v68_v30 = vld [vmem:[#allocation3 + $0x38] sm:$0xff]  ;;  %p309_p13 = por %p308_p12, %p307_p11 }
  0x3d   :  { %v83_v26 = vld [vmem:[#allocation6 + $0x30] sm:$0xff]  ;;  %146 = vadd.xlane.f32.xlu1 %v127_v20  ;;  %v128_v27 = vmul.f32 %v112_v16, %v96_v15  ;;  %v84_v31 = vld [vmem:[#allocation6 + $0x38] sm:$0xff]  ;;  %v129_v32 = vmul.f32 %v113_v24, %v97_v21  ;;  %v69_v35 = vld [vmem:[#allocation3 + $0x40] sm:$0xff]  ;;  %v335_v16 = vmov 0.0  }
  0x3e   :  { %v99_v33 = vmul.f32 %v83_v26, %v67_v25  ;;  %v115_v34 = vld [vmem:[#allocation8 + $0x30] sm:$0xff]  ;;  %v85_v36 = vld [vmem:[#allocation6 + $0x40] sm:$0xff]  ;;  %v130_v37 = vmul.f32 %v114_v29, %v98_v28  ;;  %v100_v38 = vmul.f32 %v84_v31, %v68_v30  ;;  %v116_v39 = vld [vmem:[#allocation8 + $0x38] sm:$0xff]  ;;  %60 = vst [vmem:[#allocation2] sm:$0x1] %v335_v16  ;;  %p310_p0 = pnand %p309_p13, %p303_p10 }
  0x3f   :  { %v70_v40 = vld [vmem:[#allocation3 + $0x48] sm:$0xff]  ;;  %v101_v43 = vmul.f32 %v85_v36, %v69_v35  ;;  %v117_v44 = vld [vmem:[#allocation8 + $0x40] sm:$0xff]  ;;  %v71_v45 = vld [vmem:[#allocation3 + $0x50] sm:$0xff] }
  0x40   :  { %144 = vadd.xlane.f32.xlu0 %v126_v19  ;;  %v86_v41 = vld [vmem:[#allocation6 + $0x48] sm:$0xff]  ;;  %v131_v42 = vmul.f32 %v115_v34, %v99_v33  ;;  %v87_v46 = vld [vmem:[#allocation6 + $0x50] sm:$0xff]  ;;  %v132_v47 = vmul.f32 %v116_v39, %v100_v38  ;;  %v72_v50 = vld [vmem:[#allocation3 + $0x58] sm:$0xff] }
  0x41   :  { %148 = vadd.xlane.f32.xlu1 %v128_v27  ;;  %v102_v48 = vmul.f32 %v86_v41, %v70_v40  ;;  %v118_v49 = vld [vmem:[#allocation8 + $0x48] sm:$0xff]  ;;  %v88_v51 = vld [vmem:[#allocation6 + $0x58] sm:$0xff]  ;;  %v133_v52 = vmul.f32 %v117_v44, %v101_v43  ;;  %v103_v53 = vmul.f32 %v87_v46, %v71_v45  ;;  %v119_v54 = vld [vmem:[#allocation8 + $0x50] sm:$0xff] }
  0x42   :  { %v73_v55 = vld [vmem:[#allocation3 + $0x60] sm:$0xff]  ;;  %v104_v58 = vmul.f32 %v88_v51, %v72_v50  ;;  %v120_v59 = vld [vmem:[#allocation8 + $0x58] sm:$0xff]  ;;  %v74_v60 = vld [vmem:[#allocation3 + $0x68] sm:$0xff] }
  0x43   :  { %v89_v56 = vld [vmem:[#allocation6 + $0x60] sm:$0xff]  ;;  %v134_v57 = vmul.f32 %v118_v49, %v102_v48  ;;  %v90_v61 = vld [vmem:[#allocation6 + $0x68] sm:$0xff]  ;;  %v135_v62 = vmul.f32 %v119_v54, %v103_v53  ;;  %v75_v1 = vld [vmem:[#allocation3 + $0x70] sm:$0xff] }
  0x44   :  { %150 = vadd.xlane.f32.xlu0 %v129_v32  ;;  %v105_v63 = vmul.f32 %v89_v56, %v73_v55  ;;  %v121_v0 = vld [vmem:[#allocation8 + $0x60] sm:$0xff]  ;;  %v91_v2 = vld [vmem:[#allocation6 + $0x70] sm:$0xff]  ;;  %v136_v3 = vmul.f32 %v120_v59, %v104_v58  ;;  %v106_v4 = vmul.f32 %v90_v61, %v74_v60  ;;  %v122_v5 = vld [vmem:[#allocation8 + $0x68] sm:$0xff] }
  0x45   :  { %152 = vadd.xlane.f32.xlu1 %v130_v37  ;;  %v76_v6 = vld [vmem:[#allocation3 + $0x78] sm:$0xff]  ;;  %v107_v9 = vmul.f32 %v91_v2, %v75_v1  ;;  %v123_v10 = vld [vmem:[#allocation8 + $0x70] sm:$0xff] }
  0x46   :  { %v92_v7 = vld [vmem:[#allocation6 + $0x78] sm:$0xff]  ;;  %v137_v8 = vmul.f32 %v121_v0, %v105_v63  ;;  %v138_v11 = vmul.f32 %v122_v5, %v106_v4 }
  0x47   :  { %v108_v12 = vmul.f32 %v92_v7, %v76_v6  ;;  %v124_v13 = vld [vmem:[#allocation8 + $0x78] sm:$0xff]  ;;  %v139_v14 = vmul.f32 %v123_v10, %v107_v9 }
  0x48   :  { %154 = vadd.xlane.f32.xlu0 %v131_v42  ;;  %v141_v33 = vld [vmem:[#allocation2] sm:$0x1] }
  0x49   :  { %156 = vadd.xlane.f32.xlu1 %v132_v47  ;;  %v140_v15 = vmul.f32 %v124_v13, %v108_v12 }
  0x4c   :  { %158 = vadd.xlane.f32.xlu0 %v133_v52 }
  0x4d   :  { %160 = vadd.xlane.f32.xlu1 %v134_v57 }
  0x50   :  { %162 = vadd.xlane.f32.xlu0 %v135_v62 }
  0x51   :  { %164 = vadd.xlane.f32.xlu1 %v136_v3 }
  0x54   :  { %166 = vadd.xlane.f32.xlu0 %v137_v8 }
  0x55   :  { %168 = vadd.xlane.f32.xlu1 %v138_v11 }
  0x58   :  { %170 = vadd.xlane.f32.xlu0 %v139_v14 }
  0x59   :  { %172 = vadd.xlane.f32.xlu1 %v140_v15 }
  0xc9   :  { %v143_v17 = vpop.xlane.xlu0 %142 }
  0xca   :  { %174 = vxpose.xlu0.b32.start [1/16] (narrow) %v143_v17, 8  ;;  %v147_v19 = vpop.xlane.xlu1 %146 }
  0xcd   :  { %v145_v18 = vpop.xlane.xlu0 %144 }
  0xce   :  { %175 = vxpose.xlu0.b32.cont [2/16] (narrow) %v145_v18, 8  ;;  %v149_v20 = vpop.xlane.xlu1 %148 }
  0xd1   :  { %v151_v21 = vpop.xlane.xlu0 %150 }
  0xd2   :  { %176 = vxpose.xlu0.b32.cont [3/16] (narrow) %v147_v19, 8  ;;  %v153_v22 = vpop.xlane.xlu1 %152 }
  0xd5   :  { %v155_v23 = vpop.xlane.xlu0 %154 }
  0xd6   :  { %177 = vxpose.xlu0.b32.cont [4/16] (narrow) %v149_v20, 8  ;;  %v157_v24 = vpop.xlane.xlu1 %156 }
  0xd9   :  { %v159_v25 = vpop.xlane.xlu0 %158 }
  0xda   :  { %178 = vxpose.xlu0.b32.cont [5/16] (narrow) %v151_v21, 8  ;;  %v161_v26 = vpop.xlane.xlu1 %160 }
  0xdd   :  { %v163_v27 = vpop.xlane.xlu0 %162 }
  0xde   :  { %179 = vxpose.xlu0.b32.cont [6/16] (narrow) %v153_v22, 8  ;;  %v165_v28 = vpop.xlane.xlu1 %164 }
  0xe1   :  { %v167_v29 = vpop.xlane.xlu0 %166 }
  0xe2   :  { %180 = vxpose.xlu0.b32.cont [7/16] (narrow) %v155_v23, 8  ;;  %v169_v30 = vpop.xlane.xlu1 %168 }
  0xe5   :  { %v171_v31 = vpop.xlane.xlu0 %170 }
  0xe6   :  { %181 = vxpose.xlu0.b32.cont [8/16] (narrow) %v157_v24, 8  ;;  %v173_v32 = vpop.xlane.xlu1 %172 }
  0xea   :  { %182 = vxpose.xlu0.b32.cont [9/16] (narrow) %v159_v25, 8 }
  0xee   :  { %183 = vxpose.xlu0.b32.cont [10/16] (narrow) %v161_v26, 8 }
  0xf2   :  { %184 = vxpose.xlu0.b32.cont [11/16] (narrow) %v163_v27, 8 }
  0xf6   :  { %185 = vxpose.xlu0.b32.cont [12/16] (narrow) %v165_v28, 8 }
  0xfa   :  { %186 = vxpose.xlu0.b32.cont [13/16] (narrow) %v167_v29, 8 }
  0xfe   :  { %187 = vxpose.xlu0.b32.cont [14/16] (narrow) %v169_v30, 8 }
 0x102   :  { %188 = vxpose.xlu0.b32.cont [15/16] (narrow) %v171_v31, 8 }
 0x106   :  { %189 = vxpose.xlu0.b32.end [16/16] (narrow) %v173_v32, 8 }
 0x14a   :  { %v190_v34 = vpop.trf.xlu0 }
 0x14b   :  { %v206_v35 = vadd.f32 %v190_v34, %v141_v33 }
 0x14d   :  { %207 = vst [vmem:[#allocation2] sm:$0x1] %v206_v35 }
 0x154   :  { %v211_v36 = vld [vmem:[#allocation2] sm:$0x1] }
 0x155   :  { %212 = vst [vmem:[#allocation9] sm:$0x1] %v211_v36 }
 0x156   :  { %313 = shalt.err (!%p310_p0)
}
 0x157   :  { %s314_s26 = scalar_lea.hbm %s424_s3, 16 }
 0x158   :  { %p315_p1 = scmp.ne.s32.totalorder %s424_s3, %s314_s26  ;;  %p318_p2 = scmp.lt.u32.totalorder %s314_s26, %s424_s3 }
 0x15a   :  { %p320_p3 = pnand %p318_p2, %p315_p1 }
 0x15c   :  { %323 = shalt.err (!%p320_p3)
}
 0x15d   :  { %222 = dma.vmem_to_hbm [thread:$0]  %s220_s21, 16, %s424_s3, [#allocation5]  }
 0x15e   :  { %328 = dma.done.wait [#allocation5], 16  }
 0x15f   :  { %329 = vsyncadd [#allocation5], 4294967280 }
 0x160   :  { %226 = vsyncpa [#allocation4], 1 }
 0x161   :  { %227 = vsyncpa [#allocation7], 1 }
 0x162   :  { %228 = vsyncpa [#allocation5], 1 }

</bundles_post_ra>
